<compile_context>
chip_gen: v5e
topology: v5e:2x2
jax: 0.10.0
libtpu: 0.0.40
codegen_flags: <defaults>
</compile_context>

<pallas_src>
import math

import jax
import jax.numpy as jnp
from jax import lax
from jax.experimental import pallas as pl
from jax.experimental.pallas import tpu as pltpu

EMBED_DIM = 16
NUM_HEADS = 2
HEAD_DIM = EMBED_DIM // NUM_HEADS
SEQ_Q = 8     # target (query) sequence length
SEQ_KV = 16   # source (key/value) sequence length
BATCH = 2

# dot_general dims for "A @ B.T" without materializing a transpose.
_TRANS_B_DIMS = (((1,), (1,)), ((), ()))


def _make_mha_kernel(n, lq, lkv, e, num_heads, head_dim):
    """Build a grid-less MHA kernel for fixed (static) problem sizes."""
    nq = n * lq    # stacked query rows   (batch-interleaved: row = seq*n + b)
    nkv = n * lkv  # stacked key/value rows (same interleaving)

    def kernel(qkv_ref, w_ref, b_ref, o_ref, s_ref, ctx_ref):
        # qkv_ref: (nq + 2*nkv, e) bf16  [q rows | k rows | v rows]
        # w_ref:   (e, 4e) bf16          [Wq.T*scale | Wk.T | Wv.T | Wo.T]
        # b_ref:   (1, 4e) f32           [bq*scale   | bk   | bv   | bo  ]
        # o_ref:   (nq, e) f32           output, same interleaved row order
        # s_ref:   (num_heads*nq, nkv) f32 scratch -- head-stacked scores
        # ctx_ref: (nq, e) f32 scratch -- per-head context, lane-concatenated
        w = w_ref[...]
        b = b_ref[...]

        # Fused input projections: bf16 x bf16 MXU pushes, f32 accumulation.
        # (softmax scale is already folded into the Q weight/bias columns)
        qp = jnp.dot(qkv_ref[0:nq, :], w[:, 0:e],
                     preferred_element_type=jnp.float32) + b[:, 0:e]
        kp = jnp.dot(qkv_ref[nq:nq + nkv, :], w[:, e:2 * e],
                     preferred_element_type=jnp.float32) + b[:, e:2 * e]
        vp = jnp.dot(qkv_ref[nq + nkv:nq + 2 * nkv, :], w[:, 2 * e:3 * e],
                     preferred_element_type=jnp.float32) + b[:, 2 * e:3 * e]

        qp16 = qp.astype(jnp.bfloat16)
        kp16 = kp.astype(jnp.bfloat16)
        vp16 = vp.astype(jnp.bfloat16)

        # Head-stacked scores: head h goes to sublane rows [h*nq, (h+1)*nq).
        for h in range(num_heads):
            lo = h * head_dim
            s_ref[h * nq:(h + 1) * nq, :] = lax.dot_general(
                qp16[:, lo:lo + head_dim], kp16[:, lo:lo + head_dim],
                _TRANS_B_DIMS, preferred_element_type=jnp.float32)

        # Rows/cols are batch-interleaved -> mask cross-batch entries, then run
        # ONE masked softmax over the whole stacked tile (max/exp/sum/recip x1).
        rows = lax.broadcasted_iota(jnp.int32, (num_heads * nq, nkv), 0)
        cols = lax.broadcasted_iota(jnp.int32, (num_heads * nq, nkv), 1)
        same_batch = (rows % n) == (cols % n)   # nq % n == 0, so row batch = row % n
        s = jnp.where(same_batch, s_ref[...], -1e30)
        s = s - jnp.max(s, axis=-1, keepdims=True)
        p = jnp.exp(s)
        p = p * pl.reciprocal(jnp.sum(p, axis=-1, keepdims=True), approx=True)
        p16 = p.astype(jnp.bfloat16)

        # Per-head context written into adjacent lane ranges of one scratch so
        # the output projection is a single wide MXU push (k = e, not head_dim).
        for h in range(num_heads):
            lo = h * head_dim
            ctx_ref[:, lo:lo + head_dim] = jnp.dot(
                p16[h * nq:(h + 1) * nq, :], vp16[:, lo:lo + head_dim],
                preferred_element_type=jnp.float32)

        out = jnp.dot(ctx_ref[...].astype(jnp.bfloat16), w[:, 3 * e:4 * e],
                      preferred_element_type=jnp.float32) + b[:, 3 * e:4 * e]
        o_ref[...] = out.astype(o_ref.dtype)

    return kernel


def make_mha_forward(params):
    """Returns a jitted forward pass; all weight packing is hoisted (done once)."""
    wq, wk, wv, wo, bq, bk, bv, bo = params
    scale = 1.0 / math.sqrt(HEAD_DIM)

    # One-time operand packing (constants under jit):
    #   pre-transposed weights, softmax scale folded into Wq/bq,
    #   4 weight matrices -> one bf16 slab, 4 biases -> one f32 row.
    w_packed = jnp.concatenate([wq.T * scale, wk.T, wv.T, wo.T],
                               axis=1).astype(jnp.bfloat16)            # (E, 4E)
    b_packed = jnp.concatenate([bq * scale, bk, bv, bo],
                               axis=1).astype(jnp.float32)             # (1, 4E)

    kernel = _make_mha_kernel(BATCH, SEQ_Q, SEQ_KV, EMBED_DIM,
                              NUM_HEADS, HEAD_DIM)
    nq = BATCH * SEQ_Q
    nkv = BATCH * SEQ_KV

    @jax.jit
    def fwd(q, k, v):
        # (L, N, E) -> (L*N, E) is a contiguous (free) reshape; rows stay in
        # (seq, batch) order, so no transpose is needed on input or output.
        qkv = jnp.concatenate(
            [q.reshape(nq, EMBED_DIM),
             k.reshape(nkv, EMBED_DIM),
             v.reshape(nkv, EMBED_DIM)],
            axis=0).astype(jnp.bfloat16)                               # 1 DMA

        out = pl.pallas_call(
            kernel,
            out_shape=jax.ShapeDtypeStruct((nq, EMBED_DIM), jnp.float32),
            scratch_shapes=[
                pltpu.VMEM((NUM_HEADS * nq, nkv), jnp.float32),  # stacked scores
                pltpu.VMEM((nq, EMBED_DIM), jnp.float32),        # concat'd context
            ],
        )(qkv, w_packed, b_packed)

        # (L*N, E) row-major == (L, N, E) row-major: free reshape, no transpose.
        return out.reshape(SEQ_Q, BATCH, EMBED_DIM)

    return fwd


def reference_mha(q, k, v, params):
    """Pure-JAX f32 reference mirroring torch.nn.MultiheadAttention forward."""
    wq, wk, wv, wo, bq, bk, bv, bo = params
    qb = jnp.transpose(q, (1, 0, 2))
    kb = jnp.transpose(k, (1, 0, 2))
    vb = jnp.transpose(v, (1, 0, 2))
    qp = qb @ wq.T + bq
    kp = kb @ wk.T + bk
    vp = vb @ wv.T + bv

    def split(x):
        n, L, _ = x.shape
        return x.reshape(n, L, NUM_HEADS, HEAD_DIM).transpose(0, 2, 1, 3)

    qh, kh, vh = split(qp), split(kp), split(vp)
    s = jnp.einsum("nhqd,nhkd->nhqk", qh * (1.0 / math.sqrt(HEAD_DIM)), kh)
    p = jax.nn.softmax(s, axis=-1)
    ctx = jnp.einsum("nhqk,nhkd->nhqd", p, vh)
    ctx = ctx.transpose(0, 2, 1, 3).reshape(qb.shape[0], qb.shape[1], EMBED_DIM)
    out = ctx @ wo.T + bo
    return jnp.transpose(out, (1, 0, 2))


def init_params(key):
    """Deterministic parameter init (xavier-uniform-ish weights, small biases),
    matching the parameter shapes of torch.nn.MultiheadAttention."""
    E = EMBED_DIM
    kq, kk, kv, ko, kb = jax.random.split(key, 5)
    bound = math.sqrt(6.0 / (E + E))
    wq = jax.random.uniform(kq, (E, E), jnp.float32, -bound, bound)
    wk = jax.random.uniform(kk, (E, E), jnp.float32, -bound, bound)
    wv = jax.random.uniform(kv, (E, E), jnp.float32, -bound, bound)
    wo = jax.random.uniform(ko, (E, E), jnp.float32, -bound, bound)
    biases = jax.random.uniform(kb, (4, 1, E), jnp.float32, -0.1, 0.1)
    bq, bk, bv, bo = biases[0], biases[1], biases[2], biases[3]
    return (wq, wk, wv, wo, bq, bk, bv, bo)


if __name__ == "__main__":
    root = jax.random.PRNGKey(0)
    key_p, key_q, key_k, key_v = jax.random.split(root, 4)

    params = init_params(key_p)

    # torch-style (L, N, E) inputs, batch_first=False.
    q = jax.random.normal(key_q, (SEQ_Q, BATCH, EMBED_DIM), jnp.float32)
    k = jax.random.normal(key_k, (SEQ_KV, BATCH, EMBED_DIM), jnp.float32)
    v = jax.random.normal(key_v, (SEQ_KV, BATCH, EMBED_DIM), jnp.float32)

    mha = make_mha_forward(params)
    out = jax.block_until_ready(mha(q, k, v))
    assert out.shape == (SEQ_Q, BATCH, EMBED_DIM)

    # Tight check: reference run on the same bf16-rounded weights/inputs
    # (isolates the kernel's structure from the intentional bf16 quantization).
    bf = lambda x: x.astype(jnp.bfloat16).astype(jnp.float32)
    wq, wk, wv, wo, bq, bk, bv, bo = params
    params_bf = (bf(wq), bf(wk), bf(wv), bf(wo), bq, bk, bv, bo)
    ref_bf = reference_mha(bf(q), bf(k), bf(v), params_bf)
    assert jnp.allclose(out, ref_bf, atol=2e-2, rtol=2e-2), \
        float(jnp.max(jnp.abs(out - ref_bf)))

    # Loose sanity check vs the full-f32 reference (torch-equivalent math);
    # tolerance covers bf16 MXU operands + EUP approximate-reciprocal softmax.
    ref = reference_mha(q, k, v, params)
    assert jnp.allclose(out, ref, atol=5e-2, rtol=5e-2), \
        float(jnp.max(jnp.abs(out - ref)))

    print("KERNEL_OK")
</pallas_src>

<mosaic_0001>
module attributes {stable_mosaic.version = 11 : i64} {
  func.func @kernel(%arg0: memref<80x16xbf16, #tpu.memory_space<vmem>>, %arg1: memref<16x64xbf16, #tpu.memory_space<vmem>>, %arg2: memref<1x64xf32, #tpu.memory_space<vmem>>, %arg3: memref<16x16xf32, #tpu.memory_space<vmem>>, %arg4: memref<32x32xf32, #tpu.memory_space<vmem>>, %arg5: memref<16x16xf32, #tpu.memory_space<vmem>>) attributes {dimension_semantics = [], scalar_prefetch = 0 : i64, scratch_operands = 2 : i64, tpu.core_type = #tpu.core_type<tc>} {
    %c0 = arith.constant 0 : index
    %c0_0 = arith.constant 0 : index
    %0 = vector.load %arg1[%c0, %c0_0] : memref<16x64xbf16, #tpu.memory_space<vmem>>, vector<16x64xbf16>
    %c0_1 = arith.constant 0 : index
    %c0_2 = arith.constant 0 : index
    %1 = vector.load %arg2[%c0_1, %c0_2] : memref<1x64xf32, #tpu.memory_space<vmem>>, vector<1x64xf32>
    %c0_3 = arith.constant 0 : index
    %c0_4 = arith.constant 0 : index
    %2 = vector.load %arg0[%c0_3, %c0_4] : memref<80x16xbf16, #tpu.memory_space<vmem>>, vector<16x16xbf16>
    %3 = vector.extract_strided_slice %0 {offsets = [0, 0], sizes = [16, 16], strides = [1, 1]} : vector<16x64xbf16> to vector<16x16xbf16>
    %cst = arith.constant dense<0.000000e+00> : vector<16x16xf32>
    %4 = tpu.matmul %2, %3, %cst {dimension_numbers = #tpu.dot_dimension_numbers<[1], [0], [0], [1], [0, 0, 1, 1], [], []>} : vector<16x16xbf16>, vector<16x16xbf16>, vector<16x16xf32> -> vector<16x16xf32>
    %5 = vector.extract_strided_slice %1 {offsets = [0, 0], sizes = [1, 16], strides = [1, 1]} : vector<1x64xf32> to vector<1x16xf32>
    %6 = vector.broadcast %5 : vector<1x16xf32> to vector<16x16xf32>
    %7 = arith.addf %4, %6 : vector<16x16xf32>
    %c16 = arith.constant 16 : index
    %c0_5 = arith.constant 0 : index
    %8 = vector.load %arg0[%c16, %c0_5] : memref<80x16xbf16, #tpu.memory_space<vmem>>, vector<32x16xbf16>
    %9 = vector.extract_strided_slice %0 {offsets = [0, 16], sizes = [16, 16], strides = [1, 1]} : vector<16x64xbf16> to vector<16x16xbf16>
    %cst_6 = arith.constant dense<0.000000e+00> : vector<32x16xf32>
    %10 = tpu.matmul %8, %9, %cst_6 {dimension_numbers = #tpu.dot_dimension_numbers<[1], [0], [0], [1], [0, 0, 1, 1], [], []>} : vector<32x16xbf16>, vector<16x16xbf16>, vector<32x16xf32> -> vector<32x16xf32>
    %11 = vector.extract_strided_slice %1 {offsets = [0, 16], sizes = [1, 16], strides = [1, 1]} : vector<1x64xf32> to vector<1x16xf32>
    %12 = vector.broadcast %11 : vector<1x16xf32> to vector<32x16xf32>
    %13 = arith.addf %10, %12 : vector<32x16xf32>
    %c48 = arith.constant 48 : index
    %c0_7 = arith.constant 0 : index
    %14 = vector.load %arg0[%c48, %c0_7] : memref<80x16xbf16, #tpu.memory_space<vmem>>, vector<32x16xbf16>
    %15 = vector.extract_strided_slice %0 {offsets = [0, 32], sizes = [16, 16], strides = [1, 1]} : vector<16x64xbf16> to vector<16x16xbf16>
    %cst_8 = arith.constant dense<0.000000e+00> : vector<32x16xf32>
    %16 = tpu.matmul %14, %15, %cst_8 {dimension_numbers = #tpu.dot_dimension_numbers<[1], [0], [0], [1], [0, 0, 1, 1], [], []>} : vector<32x16xbf16>, vector<16x16xbf16>, vector<32x16xf32> -> vector<32x16xf32>
    %17 = vector.extract_strided_slice %1 {offsets = [0, 32], sizes = [1, 16], strides = [1, 1]} : vector<1x64xf32> to vector<1x16xf32>
    %18 = vector.broadcast %17 : vector<1x16xf32> to vector<32x16xf32>
    %19 = arith.addf %16, %18 : vector<32x16xf32>
    %20 = arith.truncf %7 : vector<16x16xf32> to vector<16x16xbf16>
    %21 = arith.truncf %13 : vector<32x16xf32> to vector<32x16xbf16>
    %22 = arith.truncf %19 : vector<32x16xf32> to vector<32x16xbf16>
    %23 = vector.extract_strided_slice %20 {offsets = [0, 0], sizes = [16, 8], strides = [1, 1]} : vector<16x16xbf16> to vector<16x8xbf16>
    %24 = vector.extract_strided_slice %21 {offsets = [0, 0], sizes = [32, 8], strides = [1, 1]} : vector<32x16xbf16> to vector<32x8xbf16>
    %cst_9 = arith.constant dense<0.000000e+00> : vector<16x32xf32>
    %25 = tpu.matmul %23, %24, %cst_9 {dimension_numbers = #tpu.dot_dimension_numbers<[1], [1], [0], [0], [0, 0, 1, 0], [], []>} : vector<16x8xbf16>, vector<32x8xbf16>, vector<16x32xf32> -> vector<16x32xf32>
    %c0_10 = arith.constant 0 : index
    %c0_11 = arith.constant 0 : index
    %26 = vector.load %arg4[%c0_10, %c0_11] : memref<32x32xf32, #tpu.memory_space<vmem>>, vector<16x32xf32>
    tpu.vector_store %arg4[%c0_10, %c0_11], %25 {strides = array<i32>} : memref<32x32xf32, #tpu.memory_space<vmem>>, vector<16x32xf32>,
    %27 = vector.extract_strided_slice %20 {offsets = [0, 8], sizes = [16, 8], strides = [1, 1]} : vector<16x16xbf16> to vector<16x8xbf16>
    %28 = vector.extract_strided_slice %21 {offsets = [0, 8], sizes = [32, 8], strides = [1, 1]} : vector<32x16xbf16> to vector<32x8xbf16>
    %cst_12 = arith.constant dense<0.000000e+00> : vector<16x32xf32>
    %29 = tpu.matmul %27, %28, %cst_12 {dimension_numbers = #tpu.dot_dimension_numbers<[1], [1], [0], [0], [0, 0, 1, 0], [], []>} : vector<16x8xbf16>, vector<32x8xbf16>, vector<16x32xf32> -> vector<16x32xf32>
    %c16_13 = arith.constant 16 : index
    %c0_14 = arith.constant 0 : index
    %30 = vector.load %arg4[%c16_13, %c0_14] : memref<32x32xf32, #tpu.memory_space<vmem>>, vector<16x32xf32>
    tpu.vector_store %arg4[%c16_13, %c0_14], %29 {strides = array<i32>} : memref<32x32xf32, #tpu.memory_space<vmem>>, vector<16x32xf32>,
    %31 = tpu.iota {dimensions = array<i32: 0>} : vector<32x32xi32>
    %32 = tpu.iota {dimensions = array<i32: 1>} : vector<32x32xi32>
    %c2_i32 = arith.constant 2 : i32
    %c0_i32 = arith.constant 0 : i32
    %33 = arith.cmpi eq, %c2_i32, %c0_i32 : i32
    %c1_i32 = arith.constant 1 : i32
    %34 = arith.select %33, %c1_i32, %c2_i32 : i32
    %35 = vector.broadcast %34 : i32 to vector<32x32xi32>
    %36 = arith.remsi %31, %35 : vector<32x32xi32>
    %c0_i32_15 = arith.constant 0 : i32
    %37 = vector.broadcast %c0_i32_15 : i32 to vector<32x32xi32>
    %38 = arith.cmpi ne, %36, %37 : vector<32x32xi32>
    %c0_i32_16 = arith.constant 0 : i32
    %39 = vector.broadcast %c0_i32_16 : i32 to vector<32x32xi32>
    %40 = arith.cmpi slt, %36, %39 : vector<32x32xi32>
    %c0_i32_17 = arith.constant 0 : i32
    %41 = arith.cmpi slt, %34, %c0_i32_17 : i32
    %42 = vector.broadcast %41 : i1 to vector<32x32xi1>
    %43 = vector.broadcast %42 : vector<32x32xi1> to vector<32x32xi1>
    %44 = arith.xori %40, %43 : vector<32x32xi1>
    %45 = arith.andi %44, %38 : vector<32x32xi1>
    %46 = vector.broadcast %34 : i32 to vector<32x32xi32>
    %47 = arith.addi %36, %46 : vector<32x32xi32>
    %48 = arith.select %45, %47, %36 : vector<32x32xi1>, vector<32x32xi32>
    %c2_i32_18 = arith.constant 2 : i32
    %c0_i32_19 = arith.constant 0 : i32
    %49 = arith.cmpi eq, %c2_i32_18, %c0_i32_19 : i32
    %c1_i32_20 = arith.constant 1 : i32
    %50 = arith.select %49, %c1_i32_20, %c2_i32_18 : i32
    %51 = vector.broadcast %50 : i32 to vector<32x32xi32>
    %52 = arith.remsi %32, %51 : vector<32x32xi32>
    %c0_i32_21 = arith.constant 0 : i32
    %53 = vector.broadcast %c0_i32_21 : i32 to vector<32x32xi32>
    %54 = arith.cmpi ne, %52, %53 : vector<32x32xi32>
    %c0_i32_22 = arith.constant 0 : i32
    %55 = vector.broadcast %c0_i32_22 : i32 to vector<32x32xi32>
    %56 = arith.cmpi slt, %52, %55 : vector<32x32xi32>
    %c0_i32_23 = arith.constant 0 : i32
    %57 = arith.cmpi slt, %50, %c0_i32_23 : i32
    %58 = vector.broadcast %57 : i1 to vector<32x32xi1>
    %59 = vector.broadcast %58 : vector<32x32xi1> to vector<32x32xi1>
    %60 = arith.xori %56, %59 : vector<32x32xi1>
    %61 = arith.andi %60, %54 : vector<32x32xi1>
    %62 = vector.broadcast %50 : i32 to vector<32x32xi32>
    %63 = arith.addi %52, %62 : vector<32x32xi32>
    %64 = arith.select %61, %63, %52 : vector<32x32xi1>, vector<32x32xi32>
    %65 = arith.cmpi eq, %48, %64 : vector<32x32xi32>
    %c0_24 = arith.constant 0 : index
    %c0_25 = arith.constant 0 : index
    %66 = vector.load %arg4[%c0_24, %c0_25] : memref<32x32xf32, #tpu.memory_space<vmem>>, vector<32x32xf32>
    %cst_26 = arith.constant -1.000000e+30 : f32
    %67 = vector.broadcast %cst_26 : f32 to vector<32x32xf32>
    %68 = arith.select %65, %66, %67 : vector<32x32xi1>, vector<32x32xf32>
    %cst_27 = arith.constant dense<0xFF800000> : vector<32xf32>
    %69 = vector.multi_reduction <maximumf>, %68, %cst_27 [1] : vector<32x32xf32> to vector<32xf32>
    %70 = vector.shape_cast %69 : vector<32xf32> to vector<32x1xf32>
    %71 = vector.broadcast %70 : vector<32x1xf32> to vector<32x32xf32>
    %72 = arith.subf %68, %71 : vector<32x32xf32>
    %73 = math.exp %72 : vector<32x32xf32>
    %cst_28 = arith.constant dense<0.000000e+00> : vector<32xf32>
    %74 = vector.multi_reduction <add>, %73, %cst_28 [1] : vector<32x32xf32> to vector<32xf32>
    %75 = vector.shape_cast %74 : vector<32xf32> to vector<32x1xf32>
    %76 = tpu.reciprocal %75 {approx = true} : vector<32x1xf32> -> vector<32x1xf32>
    %77 = vector.broadcast %76 : vector<32x1xf32> to vector<32x32xf32>
    %78 = arith.mulf %73, %77 : vector<32x32xf32>
    %79 = arith.truncf %78 : vector<32x32xf32> to vector<32x32xbf16>
    %80 = vector.extract_strided_slice %79 {offsets = [0, 0], sizes = [16, 32], strides = [1, 1]} : vector<32x32xbf16> to vector<16x32xbf16>
    %81 = vector.extract_strided_slice %22 {offsets = [0, 0], sizes = [32, 8], strides = [1, 1]} : vector<32x16xbf16> to vector<32x8xbf16>
    %cst_29 = arith.constant dense<0.000000e+00> : vector<16x8xf32>
    %82 = tpu.matmul %80, %81, %cst_29 {dimension_numbers = #tpu.dot_dimension_numbers<[1], [0], [0], [1], [0, 0, 1, 1], [], []>} : vector<16x32xbf16>, vector<32x8xbf16>, vector<16x8xf32> -> vector<16x8xf32>
    %c0_30 = arith.constant 0 : index
    %c0_31 = arith.constant 0 : index
    %83 = vector.load %arg5[%c0_30, %c0_31] : memref<16x16xf32, #tpu.memory_space<vmem>>, vector<16x8xf32>
    tpu.vector_store %arg5[%c0_30, %c0_31], %82 {strides = array<i32>} : memref<16x16xf32, #tpu.memory_space<vmem>>, vector<16x8xf32>,
    %84 = vector.extract_strided_slice %79 {offsets = [16, 0], sizes = [16, 32], strides = [1, 1]} : vector<32x32xbf16> to vector<16x32xbf16>
    %85 = vector.extract_strided_slice %22 {offsets = [0, 8], sizes = [32, 8], strides = [1, 1]} : vector<32x16xbf16> to vector<32x8xbf16>
    %cst_32 = arith.constant dense<0.000000e+00> : vector<16x8xf32>
    %86 = tpu.matmul %84, %85, %cst_32 {dimension_numbers = #tpu.dot_dimension_numbers<[1], [0], [0], [1], [0, 0, 1, 1], [], []>} : vector<16x32xbf16>, vector<32x8xbf16>, vector<16x8xf32> -> vector<16x8xf32>
    %c0_33 = arith.constant 0 : index
    %c8 = arith.constant 8 : index
    %87 = vector.load %arg5[%c0_33, %c8] : memref<16x16xf32, #tpu.memory_space<vmem>>, vector<16x8xf32>
    tpu.vector_store %arg5[%c0_33, %c8], %86 {strides = array<i32>} : memref<16x16xf32, #tpu.memory_space<vmem>>, vector<16x8xf32>,
    %c0_34 = arith.constant 0 : index
    %c0_35 = arith.constant 0 : index
    %88 = vector.load %arg5[%c0_34, %c0_35] : memref<16x16xf32, #tpu.memory_space<vmem>>, vector<16x16xf32>
    %89 = arith.truncf %88 : vector<16x16xf32> to vector<16x16xbf16>
    %90 = vector.extract_strided_slice %0 {offsets = [0, 48], sizes = [16, 16], strides = [1, 1]} : vector<16x64xbf16> to vector<16x16xbf16>
    %cst_36 = arith.constant dense<0.000000e+00> : vector<16x16xf32>
    %91 = tpu.matmul %89, %90, %cst_36 {dimension_numbers = #tpu.dot_dimension_numbers<[1], [0], [0], [1], [0, 0, 1, 1], [], []>} : vector<16x16xbf16>, vector<16x16xbf16>, vector<16x16xf32> -> vector<16x16xf32>
    %92 = vector.extract_strided_slice %1 {offsets = [0, 48], sizes = [1, 16], strides = [1, 1]} : vector<1x64xf32> to vector<1x16xf32>
    %93 = vector.broadcast %92 : vector<1x16xf32> to vector<16x16xf32>
    %94 = arith.addf %91, %93 : vector<16x16xf32>
    %c0_37 = arith.constant 0 : index
    %c0_38 = arith.constant 0 : index
    %95 = vector.load %arg3[%c0_37, %c0_38] : memref<16x16xf32, #tpu.memory_space<vmem>>, vector<16x16xf32>
    tpu.vector_store %arg3[%c0_37, %c0_38], %94 {strides = array<i32>} : memref<16x16xf32, #tpu.memory_space<vmem>>, vector<16x16xf32>,
    return
  }
}

</mosaic_0001>

<bundles_post_ra>
// kernel: fwd.1
= control target key start
LH: loop header
LB: loop body
LE: loop exit
PB: predicated region body
PF: predicated region fallthrough
CT: control target
= control target key end

     0   :  { %s672_s0 = inlined_call_operand.vmem [shape: bf16[80,16], index: 0, kind: input, shape index: {}]   ;;  %s673_s1 = inlined_call_operand.vmem [shape: bf16[16,64], index: 1, kind: input, shape index: {}]   ;;  %s674_s2 = inlined_call_operand.vmem [shape: f32[1,64], index: 2, kind: input, shape index: {}]   ;;  %s675_s3 = inlined_call_operand.hbm [shape: f32[16,16], index: 3, kind: output, shape index: {}]  }
   0x1   :  { %v594_v0 = vld [vmem:[%s673_s1] sm:$0xff] }
   0x2   :  { %8 = vsyncpa [#allocation5], 0  ;;  %s564_s14 = smov 112   ;;  %46 = vmatpush.bf16.msra.mxu0 %v594_v0  ;;  %v601_v1 = vld [vmem:[%s674_s2] ss:$0 sm:$0xff]  ;;  %vm35_vm0 = vcmask 130048   ;;  %v226_v43 = vlaneseq }
   0x3   :  { %67 = vrot.lane.b32.xlu0 %v594_v0, %s564_s14  ;;  %v509_v2 = vld [vmem:[%s672_s0] sm:$0xff]  ;;  %v510_v4 = vld [vmem:[%s672_s0 + $0x8] sm:$0xff]  ;;  %v511_v5 = vld [vmem:[%s672_s0 + $0x10] sm:$0xff]  ;;  %s565_s21 = smov 120   ;;  %s566_s22 = smov 96   ;;  %vm168_vm1 = vcmask 64512  }
   0x4   :  { %v512_v42 = vld [vmem:[%s672_s0 + $0x18] sm:$0xff]  ;;  %v513_v44 = vld [vmem:[%s672_s0 + $0x20] sm:$0xff]  ;;  %vm192_vm2 = vcmask 261120   ;;  %v227_v45 = vshrl.u32 %v226_v43, 7  ;;  %v232_v46 = vand.u32 127, %v226_v43  ;;  %s567_s0 = smov 80  }
   0x5   :  { %482 = vmatmul.msk.bf16.vlgmr.msra.gmra.mxu0 %vm35_vm0, %v509_v2  ;;  %s568_s27 = smov 8   ;;  %vm425_vm7 = vcmask 130112   ;;  %s569_s28 = smov [#allocation4]  }
   0x6   :  { %v237_v48 = vand.u32 1, %v227_v45  ;;  %v285_v49 = vand.u32 1, %v232_v46  ;;  %v229_v54 = vadd.s32 16, %v227_v45  ;;  %v228_v57 = vadd.s32 8, %v227_v45  ;;  %s460_s29 = sshll.u32 %s569_s28, 4  ;;  %s462_s5 = sshll.u32 %s675_s3, 4  ;;  %s461_s29 = int_to_ptr.vmem [resolvable:$true] %s460_s29  ;;  %s463_s5 = int_to_ptr.hbm [resolvable:$true] %s462_s5 }
   0x7   :  { %v230_v58 = vadd.s32 24, %v227_v45  ;;  %s570_s6 = smov 128  }
   0x8   :  { %vm293_vm3 = vcmp.eq.s32.totalorder %v237_v48, %v285_v49  ;;  %v251_v56 = vand.u32 1, %v229_v54  ;;  %v244_v61 = vand.u32 1, %v228_v57 }
   0x9   :  { %v258_v2 = vand.u32 1, %v230_v58 }
   0xa   :  { %vm295_vm4 = vcmp.eq.s32.totalorder %v251_v56, %v285_v49  ;;  %vm294_vm5 = vcmp.eq.s32.totalorder %v244_v61, %v285_v49 }
   0xb   :  { %70 = vrot.lane.b32.xlu0 %v601_v1, %s564_s14  ;;  %vm296_vm6 = vcmp.eq.s32.totalorder %v258_v2, %v285_v49 }
  0x75   :  { %v68_v3 = vpop.permute.xlu0 %67 }
  0x76   :  { %86 = vmatpush.bf16.msra.mxu1 %v68_v3 }
  0x79   :  { %491 = vmatmul.msk.bf16.vlgmr.msra.gmra.mxu1 %vm35_vm0, %v510_v4 }
  0x7d   :  { %v71_v18 = vpop.permute.xlu0 %70 }
  0x82   :  { %v48_v6 = vpop.f32.mrf.mxu0 }
  0x83   :  { %v49_v8 = vadd.f32 %v601_v1, %v48_v6 }
  0x85   :  { %v143_v9 = vpack.c.bf16 %v49_v8, %v49_v8 }
  0x87   :  { %v155_v13 = vunpack.c.l.b16 %v143_v9 }
  0x89   :  { %492 = vmatmul.msk.bf16.gmra.mxu1 %vm35_vm0, %v511_v5 }
  0x8a   :  { %v50_v10 = vpop.f32.mrf.mxu0 }
  0x8b   :  { %v51_v11 = vadd.f32 %v601_v1, %v50_v10 }
  0x8d   :  { %v144_v14 = vpack.c.bf16 %v51_v11, %v51_v11 }
  0x8f   :  { %v156_v15 = vunpack.c.l.b16 %v144_v14 }
  0x91   :  { %v157_v16 = vpack.c.b16 %v156_v15, %v155_v13 }
  0x93   :  { %195 = vrot.lane.b32.xlu2 %v157_v16, %s565_s21 }
  0x9b   :  { %112 = vrot.lane.b32.xlu2 %v594_v0, %s566_s22 }
  0xa3   :  { %115 = vrot.lane.b32.xlu2 %v601_v1, %s566_s22 }
  0xed   :  { %v196_v38 = vpop.permute.xlu2 %195 }
  0xf5   :  { %v113_v41 = vpop.permute.xlu2 %112 }
  0xf6   :  { %v88_v7 = vpop.f32.mrf.mxu1  ;;  %131 = vmatpush.bf16.msra.mxu2 %v113_v41 }
  0xf7   :  { %v89_v24 = vadd.f32 %v88_v7, %v71_v18 }
  0xf9   :  { %v145_v29 = vpack.c.bf16 %v89_v24, %v89_v24  ;;  %501 = vmatmul.msk.bf16.vlgmr.msra.gmra.mxu2 %vm35_vm0, %v512_v42 }
  0xfb   :  { %v162_v33 = vunpack.c.l.b16 %v145_v29 }
  0xfd   :  { %v116_v13 = vpop.permute.xlu2 %115 }
  0xfe   :  { %v90_v12 = vpop.f32.mrf.mxu1 }
  0xff   :  { %v91_v21 = vadd.f32 %v90_v12, %v71_v18 }
 0x101   :  { %v146_v26 = vpack.c.bf16 %v91_v21, %v91_v21 }
 0x103   :  { %v163_v31 = vunpack.c.l.b16 %v146_v26 }
 0x105   :  { %v166_v34 = vpack.c.b16 %v163_v31, %v162_v33 }
 0x106   :  { %v93_v17 = vpop.f32.mrf.mxu1 }
 0x107   :  { %v94_v19 = vadd.f32 %v93_v17, %v71_v18  ;;  %v173_v35 = vsel %vm168_vm1, %v166_v34, 0 }
 0x109   :  { %v147_v22 = vpack.c.bf16 %v94_v19, %v94_v19  ;;  %502 = vmatmul.msk.bf16.gmra.mxu2 %vm35_vm0, %v513_v44 }
 0x10b   :  { %v164_v27 = vunpack.c.l.b16 %v147_v22 }
 0x10e   :  { %v95_v20 = vpop.f32.mrf.mxu1 }
 0x10f   :  { %v96_v23 = vadd.f32 %v95_v20, %v71_v18 }
 0x111   :  { %v148_v25 = vpack.c.bf16 %v96_v23, %v96_v23 }
 0x113   :  { %v165_v28 = vunpack.c.l.b16 %v148_v25 }
 0x115   :  { %v167_v30 = vpack.c.b16 %v165_v28, %v164_v27 }
 0x117   :  { %199 = vrot.lane.b32.xlu1 %v167_v30, %s565_s21  ;;  %v176_v32 = vsel %vm168_vm1, %v167_v30, 0 }
 0x118   :  { %184 = vmatpush.bf16.xpose.msra.mxu3 %v176_v32 }
 0x11f   :  { %197 = vrot.lane.b32.xlu1 %v166_v34, %s565_s21 }
 0x120   :  { %185 = vmatpush.bf16.xpose.msra.mxu3 %v173_v35 }
 0x127   :  { %503 = vmatmul.msk.bf16.vlgmr.msra.gmra.mxu3 %vm168_vm1, %v157_v16 }
 0x17c   :  { %v133_v9 = vpop.f32.mrf.mxu2 }
 0x17d   :  { %v134_v16 = vadd.f32 %v133_v9, %v116_v13 }
 0x17f   :  { %v149_v20 = vpack.c.bf16 %v134_v16, %v134_v16 }
 0x181   :  { %v362_v24 = vunpack.c.l.b16 %v149_v20 }
 0x184   :  { %v135_v10 = vpop.f32.mrf.mxu2 }
 0x185   :  { %v136_v17 = vadd.f32 %v135_v10, %v116_v13 }
 0x187   :  { %v150_v21 = vpack.c.bf16 %v136_v17, %v136_v17 }
 0x189   :  { %v200_v36 = vpop.permute.xlu1 %199  ;;  %v363_v25 = vunpack.c.l.b16 %v150_v21 }
 0x18a   :  { %v208_v37 = vsel %vm168_vm1, %v200_v36, 0 }
 0x18b   :  { %216 = vmatpush.bf16.xpose.msrb.mxu0 %v208_v37  ;;  %v366_v27 = vpack.c.b16 %v363_v25, %v362_v24 }
 0x18c   :  { %v138_v11 = vpop.f32.mrf.mxu2 }
 0x18d   :  { %v139_v14 = vadd.f32 %v138_v11, %v116_v13 }
 0x18f   :  { %v151_v18 = vpack.c.bf16 %v139_v14, %v139_v14 }
 0x191   :  { %v198_v39 = vpop.permute.xlu1 %197  ;;  %v364_v22 = vunpack.c.l.b16 %v151_v18 }
 0x192   :  { %v205_v40 = vsel %vm168_vm1, %v198_v39, 0 }
 0x193   :  { %217 = vmatpush.bf16.xpose.msrb.mxu0 %v205_v40 }
 0x194   :  { %v140_v12 = vpop.f32.mrf.mxu2 }
 0x195   :  { %v141_v15 = vadd.f32 %v140_v12, %v116_v13 }
 0x197   :  { %v152_v19 = vpack.c.bf16 %v141_v15, %v141_v15 }
 0x199   :  { %v365_v23 = vunpack.c.l.b16 %v152_v19 }
 0x19a   :  { %504 = vmatmul.msk.bf16.vlgmr.msrb.gmra.mxu0 %vm168_vm1, %v196_v38 }
 0x19b   :  { %v367_v26 = vpack.c.b16 %v365_v23, %v364_v22 }
 0x19d   :  { %379 = vmatpush.bf16.msrb.mxu3 %v367_v26 }
 0x1a1   :  { %380 = vmatpush.bf16.msrb.mxu3 %v366_v27 }
 0x1aa   :  { %v187_v47 = vpop.f32.mrf.mxu3 }
 0x1ab   :  { %193 = vst.msk [vmem:[#allocation2] sm:$0xff] %vm192_vm2, %v187_v47 }
 0x1b2   :  { %v297_v50 = vld [vmem:[#allocation2] sm:$0xff]  ;;  %v189_v51 = vpop.f32.mrf.mxu3 }
 0x1b3   :  { %v638_v52 = vsel %vm293_vm3, %v297_v50, -1e+30  ;;  %194 = vst.msk [vmem:[#allocation2 + $0x8] sm:$0xff] %vm192_vm2, %v189_v51 }
 0x1b4   :  { %v305_v53 = vsel %vm192_vm2, %v638_v52, -inf }
 0x1b5   :  { %306 = vmax.xlane.f32.xlu2 %v305_v53 }
 0x1ba   :  { %v298_v3 = vld [vmem:[#allocation2 + $0x8] sm:$0xff] }
 0x1bb   :  { %v302_v4 = vsel %vm294_vm5, %v298_v3, -1e+30 }
 0x1bc   :  { %v308_v8 = vsel %vm192_vm2, %v302_v4, -inf }
 0x217   :  { %v219_v55 = vpop.f32.mrf.mxu0 }
 0x218   :  { %224 = vst.msk [vmem:[#allocation2 + $0x10] sm:$0xff] %vm192_vm2, %v219_v55 }
 0x21f   :  { %v221_v59 = vpop.f32.mrf.mxu0  ;;  %v299_v60 = vld [vmem:[#allocation2 + $0x10] sm:$0xff] }
 0x220   :  { %225 = vst.msk [vmem:[#allocation2 + $0x18] sm:$0xff] %vm192_vm2, %v221_v59  ;;  %v303_v62 = vsel %vm295_vm4, %v299_v60, -1e+30 }
 0x221   :  { %v311_v63 = vsel %vm192_vm2, %v303_v62, -inf }
 0x222   :  { %312 = vmax.xlane.f32.xlu0 %v311_v63 }
 0x227   :  { %v300_v5 = vld [vmem:[#allocation2 + $0x18] sm:$0xff] }
 0x228   :  { %v304_v6 = vsel %vm296_vm6, %v300_v5, -1e+30  ;;  %v307_v31 = vpop.xlane.xlu2 %306 }
 0x229   :  { %v314_v7 = vsel %vm192_vm2, %v304_v6, -inf  ;;  %v317_v35 = vsub.f32 %v638_v52, %v307_v31 }
 0x22a   :  { %315 = vmax.xlane.f32.xlu1 %v314_v7  ;;  %309 = vmax.xlane.f32.xlu0 %v308_v8 }
 0x22b   :  { %v321_v38 = vmul.f32 1.442695, %v317_v35 }
 0x23e   :  { %396 = vrot.lane.b32.xlu0 %v367_v26, %s565_s21 }
 0x295   :  { %v313_v28 = vpop.xlane.xlu0 %312 }
 0x296   :  { %v319_v29 = vsub.f32 %v303_v62, %v313_v28 }
 0x298   :  { %v325_v30 = vmul.f32 1.442695, %v319_v29 }
 0x29a   :  { %522 = vpow2.f32 %v325_v30 }
 0x29d   :  { %v316_v32 = vpop.xlane.xlu1 %315  ;;  %v310_v39 = vpop.xlane.xlu0 %309 }
 0x29e   :  { %v320_v33 = vsub.f32 %v304_v6, %v316_v32  ;;  %v318_v41 = vsub.f32 %v302_v4, %v310_v39 }
 0x2a0   :  { %v523_v34 = vpop.eup %522  ;;  %v327_v36 = vmul.f32 1.442695, %v320_v33  ;;  %v323_v43 = vmul.f32 1.442695, %v318_v41 }
 0x2a1   :  { %v335_v37 = vsel %vm192_vm2, %v523_v34, 0.0 }
 0x2a2   :  { %524 = vpow2.f32 %v327_v36  ;;  %336 = vadd.xlane.f32.xlu1 %v335_v37 }
 0x2a3   :  { %526 = vpow2.f32 %v321_v38 }
 0x2a4   :  { %528 = vpow2.f32 %v323_v43 }
 0x2a8   :  { %v525_v40 = vpop.eup %524 }
 0x2a9   :  { %v338_v42 = vsel %vm192_vm2, %v525_v40, 0.0  ;;  %v527_v44 = vpop.eup %526 }
 0x2aa   :  { %339 = vadd.xlane.f32.xlu2 %v338_v42  ;;  %v329_v45 = vsel %vm192_vm2, %v527_v44, 0.0  ;;  %v529_v46 = vpop.eup %528 }
 0x2ab   :  { %v332_v47 = vsel %vm192_vm2, %v529_v46, 0.0 }
 0x2b0   :  { %v397_v48 = vpop.permute.xlu0 %396 }
 0x2b1   :  { %409 = vmatpush.bf16.msra.mxu0 %v397_v48 }
 0x2b2   :  { %330 = vadd.xlane.f32.xlu2 %v329_v45 }
 0x2ba   :  { %333 = vadd.xlane.f32.xlu2 %v332_v47 }
 0x2bb   :  { %394 = vrot.lane.b32.xlu1 %v366_v27, %s565_s21 }
 0x2c3   :  { %431 = vrot.lane.b32.xlu1 %v594_v0, %s567_s0 }
 0x315   :  { %v337_v49 = vpop.xlane.xlu1 %336 }
 0x316   :  { %530 = vrcp.f32 %v337_v49 }
 0x31c   :  { %v531_v51 = vpop.eup %530 }
 0x31d   :  { %v340_v50 = vpop.xlane.xlu2 %339  ;;  %v347_v53 = vmul.f32 %v531_v51, %v523_v34 }
 0x31e   :  { %532 = vrcp.f32 %v340_v50 }
 0x31f   :  { %v351_v57 = vpack.c.bf16 %v347_v53, %v347_v53 }
 0x321   :  { %v391_v59 = vunpack.c.l.b16 %v351_v57 }
 0x324   :  { %v533_v52 = vpop.eup %532 }
 0x325   :  { %v348_v54 = vmul.f32 %v533_v52, %v525_v40  ;;  %v331_v55 = vpop.xlane.xlu2 %330 }
 0x326   :  { %534 = vrcp.f32 %v331_v55 }
 0x327   :  { %v352_v56 = vpack.c.bf16 %v348_v54, %v348_v54 }
 0x329   :  { %v392_v58 = vunpack.c.l.b16 %v352_v56 }
 0x32b   :  { %v393_v0 = vpack.c.b16 %v392_v58, %v391_v59 }
 0x32c   :  { %v535_v62 = vpop.eup %534 }
 0x32d   :  { %v395_v60 = vpop.permute.xlu1 %394  ;;  %v334_v61 = vpop.xlane.xlu2 %333  ;;  %v345_v63 = vmul.f32 %v535_v62, %v527_v44 }
 0x32e   :  { %536 = vrcp.f32 %v334_v61  ;;  %410 = vmatpush.bf16.msra.mxu0 %v395_v60 }
 0x32f   :  { %v349_v3 = vpack.c.bf16 %v345_v63, %v345_v63 }
 0x331   :  { %506 = vmatmul.msk.bf16.vlgmr.msra.gmra.mxu0 %vm192_vm2, %v393_v0  ;;  %v355_v6 = vunpack.c.l.b16 %v349_v3 }
 0x334   :  { %v537_v2 = vpop.eup %536 }
 0x335   :  { %v346_v4 = vmul.f32 %v537_v2, %v529_v46  ;;  %v432_v9 = vpop.permute.xlu1 %431 }
 0x336   :  { %447 = vmatpush.bf16.msrb.mxu1 %v432_v9 }
 0x337   :  { %v350_v5 = vpack.c.bf16 %v346_v4, %v346_v4 }
 0x339   :  { %v356_v7 = vunpack.c.l.b16 %v350_v5 }
 0x33b   :  { %v357_v8 = vpack.c.b16 %v356_v7, %v355_v6 }
 0x33d   :  { %505 = vmatmul.msk.bf16.vlgmr.msrb.gmra.mxu3 %vm192_vm2, %v357_v8 }
 0x3ae   :  { %v412_v10 = vpop.f32.mrf.mxu0 }
 0x3af   :  { %419 = vrot.lane.b32.xlu0 %v412_v10, %s568_s27 }
 0x3b6   :  { %v414_v11 = vpop.f32.mrf.mxu0 }
 0x3b7   :  { %421 = vrot.lane.b32.xlu2 %v414_v11, %s568_s27  ;;  %434 = vrot.lane.b32.xlu0 %v601_v1, %s567_s0 }
 0x3c0   :  { %v382_v12 = vpop.f32.mrf.mxu3 }
 0x3c1   :  { %387 = vst.msk [vmem:[#allocation3] sm:$0xff] %vm168_vm1, %v382_v12 }
 0x3c8   :  { %v384_v13 = vpop.f32.mrf.mxu3 }
 0x3c9   :  { %388 = vst.msk [vmem:[#allocation3 + $0x8] sm:$0xff] %vm168_vm1, %v384_v13 }
 0x411   :  { %v422_v14 = vpop.permute.xlu2 %421 }
 0x412   :  { %427 = vst.msk [vmem:[#allocation3 + $0x8] sm:$0xff] %vm425_vm7, %v422_v14 }
 0x419   :  { %v429_v17 = vld [vmem:[#allocation3 + $0x8] sm:$0xff] }
 0x421   :  { %v420_v15 = vpop.permute.xlu0 %419 }
 0x422   :  { %426 = vst.msk [vmem:[#allocation3] sm:$0xff] %vm425_vm7, %v420_v15 }
 0x429   :  { %v428_v16 = vld [vmem:[#allocation3] sm:$0xff]  ;;  %v435_v19 = vpop.permute.xlu0 %434 }
 0x42a   :  { %v430_v18 = vpack.c.bf16 %v429_v17, %v428_v16 }
 0x42c   :  { %507 = vmatmul.msk.bf16.vlgmr.msrb.gmra.mxu1 %vm35_vm0, %v430_v18 }
 0x4a9   :  { %v449_v20 = vpop.f32.mrf.mxu1 }
 0x4aa   :  { %v450_v21 = vadd.f32 %v449_v20, %v435_v19 }
 0x4ac   :  { %454 = vst.msk [vmem:[#allocation4] sm:$0xff] %vm35_vm0, %v450_v21 }
 0x4b1   :  { %v451_v1 = vpop.f32.mrf.mxu1 }
 0x4b2   :  { %v452_v22 = vadd.f32 %v451_v1, %v435_v19 }
 0x4b4   :  { %455 = vst.msk [vmem:[#allocation4 + $0x8] sm:$0xff] %vm35_vm0, %v452_v22 }
 0x4b5   :  { %468 = dma.vmem_to_hbm [thread:$0]  %s461_s29, 256, %s463_s5, [#allocation5], %s570_s6, %s570_s6, %s568_s27  }
 0x4b6   :  { %562 = dma.done.wait [#allocation5], 256  }
 0x4b7   :  { %563 = vsyncadd [#allocation5], 4294967040 }
 0x4b8   :  { %473 = vsyncpa [#allocation5], 1 }

</bundles_post_ra>
